<compile_context>
chip_gen: v6e
topology: v6e:2x2x1
jax: 0.10.0
libtpu: 0.0.40
codegen_flags: <defaults>
</compile_context>

<pallas_src>
import functools

import numpy as np
import jax
import jax.numpy as jnp
from jax.experimental import pallas as pl
from jax.experimental.pallas import tpu as pltpu


def _block_kernel(x_ref, w1_ref, b1_ref, w2_ref, b2_ref, o_ref,
                  im1_ref, im2_ref, *, nb, H, W, cin, cout):
    Wc1 = W * cin
    Wc2 = W * cout
    zrow1 = jnp.zeros((1, Wc1), jnp.float32)
    zrow2 = jnp.zeros((1, Wc2), jnp.float32)

    # ---- im2row staging for conv1: lane segment dy of row (n,h) holds the
    #      input row h+dy-1 of image n (zero rows at the vertical borders =
    #      'same' padding; horizontal padding is baked into the weights). ----
    for n in range(nb):
        r0 = n * H
        x_n = x_ref[n]                                   # (H, W*cin) f32
        # dy = 0 tap: row h reads input row h-1 (zero at the top border)
        im1_ref[r0:r0 + 1, 0:Wc1] = zrow1
        im1_ref[r0 + 1:r0 + H, 0:Wc1] = x_n[0:H - 1, :]
        # dy = 1 tap: aligned
        im1_ref[r0:r0 + H, Wc1:2 * Wc1] = x_n
        # dy = 2 tap: row h reads input row h+1 (zero at the bottom border)
        im1_ref[r0:r0 + H - 1, 2 * Wc1:3 * Wc1] = x_n[1:H, :]
        im1_ref[r0 + H - 1:r0 + H, 2 * Wc1:3 * Wc1] = zrow1

    # ---- conv1 + bias + ReLU: ONE MXU matmul, bf16 operands, f32 accum ----
    lhs1 = im1_ref[...].astype(jnp.bfloat16)             # (nb*H, 3*W*cin)
    acc1 = jnp.dot(lhs1, w1_ref[...], preferred_element_type=jnp.float32)
    hidden = jnp.maximum(acc1 + b1_ref[...], 0.0)        # (nb*H, W*cout) f32

    # ---- im2row staging for conv2 (same construction on the hidden map) ----
    for n in range(nb):
        r0 = n * H
        h_n = hidden[r0:r0 + H, :]
        im2_ref[r0:r0 + 1, 0:Wc2] = zrow2
        im2_ref[r0 + 1:r0 + H, 0:Wc2] = h_n[0:H - 1, :]
        im2_ref[r0:r0 + H, Wc2:2 * Wc2] = h_n
        im2_ref[r0:r0 + H - 1, 2 * Wc2:3 * Wc2] = h_n[1:H, :]
        im2_ref[r0 + H - 1:r0 + H, 2 * Wc2:3 * Wc2] = zrow2

    # ---- conv2 + bias + ReLU, fused into the single lane-dense store ----
    lhs2 = im2_ref[...].astype(jnp.bfloat16)             # (nb*H, 3*W*cout)
    acc2 = jnp.dot(lhs2, w2_ref[...], preferred_element_type=jnp.float32)
    out = jnp.maximum(acc2 + b2_ref[...], 0.0)
    o_ref[...] = out.reshape(o_ref.shape)


def _banded_weight(w_oihw, w_spatial):
    """(Cout, Cin, 3, 3) torch weight -> (3*W*Cin, W*Cout) im2row weight.

    Row index dy*(W*Cin) + wi*Cin + ci carries W[:, ci, dy, dx] at output
    column wo*Cout + co whenever wi == wo + dx - 1; out-of-range (wi) blocks
    stay zero, which bakes the horizontal 'same' padding into the weight.
    The leading dy axis matches the three lane segments of the im2row LHS.
    """
    cout, cin, kh, kw = w_oihw.shape
    wt = jnp.transpose(w_oihw.astype(jnp.float32), (2, 3, 1, 0))  # (dy,dx,ci,co)
    sel = np.zeros((kw, w_spatial, w_spatial), np.float32)
    for dx in range(kw):
        for wo in range(w_spatial):
            wi = wo + dx - 1
            if 0 <= wi < w_spatial:
                sel[dx, wi, wo] = 1.0
    band = jnp.einsum('xpw,yxio->ypiwo', jnp.asarray(sel), wt)
    return band.reshape(kh * w_spatial * cin, w_spatial * cout)


def block_forward(x_nchw, w1, b1, w2, b2, *, images_per_step=None):
    """Forward of `Block` (two 3x3 same-padded convs with ReLU), NCHW in/out.

    images_per_step: images folded into the M dimension of each grid step.
      Default = N (single grid step; best on single-TensorCore v5e/v6e).
      On v7x pass N//2 to keep a 2-way 'parallel' grid across both cores.
    """
    N, cin, H, W = x_nchw.shape
    cout = w1.shape[0]
    nb = N if images_per_step is None else images_per_step
    assert N % nb == 0, "images_per_step must divide the batch"
    grid_n = N // nb

    # --- glue: NCHW -> row-flattened NHWC + banded (im2row) weights --------
    x_flat = jnp.transpose(x_nchw, (0, 2, 3, 1)).astype(jnp.float32)
    x_flat = x_flat.reshape(N, H, W * cin)

    w1_band = _banded_weight(w1, W).astype(jnp.bfloat16)   # (3*W*cin,  W*cout)
    w2_band = _banded_weight(w2, W).astype(jnp.bfloat16)   # (3*W*cout, W*cout)
    b1_t = jnp.tile(b1.astype(jnp.float32), W).reshape(1, W * cout)
    b2_t = jnp.tile(b2.astype(jnp.float32), W).reshape(1, W * cout)

    kernel = functools.partial(_block_kernel, nb=nb, H=H, W=W,
                               cin=cin, cout=cout)

    y_flat = pl.pallas_call(
        kernel,
        out_shape=jax.ShapeDtypeStruct((N, H, W * cout), jnp.float32),
        grid_spec=pltpu.PrefetchScalarGridSpec(
            num_scalar_prefetch=0,
            grid=(grid_n,),
            in_specs=[
                pl.BlockSpec((nb, H, W * cin), lambda i: (i, 0, 0)),
                # Constant (grid-invariant) banded weights / biases; tiny here
                # (~0.1 MB in bf16).  See module TODO for the scaling path.
                pl.BlockSpec((3 * W * cin, W * cout), lambda i: (0, 0)),
                pl.BlockSpec((1, W * cout), lambda i: (0, 0)),
                pl.BlockSpec((3 * W * cout, W * cout), lambda i: (0, 0)),
                pl.BlockSpec((1, W * cout), lambda i: (0, 0)),
            ],
            out_specs=pl.BlockSpec((nb, H, W * cout), lambda i: (i, 0, 0)),
            scratch_shapes=[
                pltpu.VMEM((nb * H, 3 * W * cin), jnp.float32),   # im2row LHS 1
                pltpu.VMEM((nb * H, 3 * W * cout), jnp.float32),  # im2row LHS 2
            ],
        ),
        compiler_params=pltpu.CompilerParams(
            dimension_semantics=("parallel",)),
    )(x_flat, w1_band, b1_t, w2_band, b2_t)

    y = y_flat.reshape(N, H, W, cout)
    return jnp.transpose(y, (0, 3, 1, 2))                  # back to NCHW


def _reference(x, w1, b1, w2, b2):
    dn = ('NCHW', 'OIHW', 'NCHW')
    y = jax.lax.conv_general_dilated(x, w1, (1, 1), 'SAME',
                                     dimension_numbers=dn)
    y = jax.nn.relu(y + b1[None, :, None, None])
    y = jax.lax.conv_general_dilated(y, w2, (1, 1), 'SAME',
                                     dimension_numbers=dn)
    return jax.nn.relu(y + b2[None, :, None, None])


if __name__ == "__main__":
    key = jax.random.PRNGKey(0)
    k0, k1, k2, k3, k4 = jax.random.split(key, 5)

    N, CIN, COUT, H, W = 2, 4, 8, 16, 16
    x = jax.random.normal(k0, (N, CIN, H, W), jnp.float32)
    # Deterministic synthetic parameters (shapes match Conv2d(cin, cout, 3)).
    w1 = jax.random.normal(k1, (COUT, CIN, 3, 3), jnp.float32) * 0.1
    b1 = jax.random.normal(k2, (COUT,), jnp.float32) * 0.1
    w2 = jax.random.normal(k3, (COUT, COUT, 3, 3), jnp.float32) * 0.1
    b2 = jax.random.normal(k4, (COUT,), jnp.float32) * 0.1

    y = block_forward(x, w1, b1, w2, b2)
    jax.block_until_ready(y)

    y_ref = _reference(x, w1, b1, w2, b2)
    assert y.shape == y_ref.shape == (N, COUT, H, W)
    max_err = float(jnp.max(jnp.abs(y - y_ref)))
    # bf16 MXU operands (weights + im2row LHS) with f32 accumulation:
    # tolerance loosened accordingly.
    assert jnp.allclose(y, y_ref, atol=3e-2, rtol=3e-2), max_err

    print("KERNEL_OK")
</pallas_src>

<mosaic_0001>
module attributes {stable_mosaic.version = 11 : i64} {
  func.func @_block_kernel(%arg0: i32, %arg1: memref<2x16x64xf32, #tpu.memory_space<vmem>>, %arg2: memref<192x128xbf16, #tpu.memory_space<vmem>>, %arg3: memref<1x128xf32, #tpu.memory_space<vmem>>, %arg4: memref<384x128xbf16, #tpu.memory_space<vmem>>, %arg5: memref<1x128xf32, #tpu.memory_space<vmem>>, %arg6: memref<2x16x128xf32, #tpu.memory_space<vmem>>, %arg7: memref<32x192xf32, #tpu.memory_space<vmem>>, %arg8: memref<32x384xf32, #tpu.memory_space<vmem>>) attributes {dimension_semantics = [#tpu.dimension_semantics<parallel>], iteration_bounds = array<i64: 1>, scalar_prefetch = 0 : i64, scratch_operands = 2 : i64, tpu.core_type = #tpu.core_type<tc>, window_params = [{transform_indices = @transform_0, window_bounds = array<i64: 2, 16, 64>}, {pipeline_mode = #tpu.pipeline_mode<synchronous>, transform_indices = @transform_1, window_bounds = array<i64: 192, 128>}, {pipeline_mode = #tpu.pipeline_mode<synchronous>, transform_indices = @transform_2, window_bounds = array<i64: 1, 128>}, {pipeline_mode = #tpu.pipeline_mode<synchronous>, transform_indices = @transform_3, window_bounds = array<i64: 384, 128>}, {pipeline_mode = #tpu.pipeline_mode<synchronous>, transform_indices = @transform_4, window_bounds = array<i64: 1, 128>}, {transform_indices = @transform_5, window_bounds = array<i64: 2, 16, 128>}]} {
    %cst = arith.constant 0.000000e+00 : f32
    %0 = vector.broadcast %cst : f32 to vector<1x64xf32>
    %cst_0 = arith.constant 0.000000e+00 : f32
    %1 = vector.broadcast %cst_0 : f32 to vector<1x128xf32>
    %c0 = arith.constant 0 : index
    %c0_1 = arith.constant 0 : index
    %c0_2 = arith.constant 0 : index
    %2 = vector.load %arg1[%c0, %c0_1, %c0_2] : memref<2x16x64xf32, #tpu.memory_space<vmem>>, vector<1x16x64xf32>
    %3 = vector.shape_cast %2 : vector<1x16x64xf32> to vector<16x64xf32>
    %c0_3 = arith.constant 0 : index
    %c0_4 = arith.constant 0 : index
    %4 = vector.load %arg7[%c0_3, %c0_4] : memref<32x192xf32, #tpu.memory_space<vmem>>, vector<1x64xf32>
    tpu.vector_store %arg7[%c0_3, %c0_4], %0 {strides = array<i32>} : memref<32x192xf32, #tpu.memory_space<vmem>>, vector<1x64xf32>,
    %5 = vector.extract_strided_slice %3 {offsets = [0, 0], sizes = [15, 64], strides = [1, 1]} : vector<16x64xf32> to vector<15x64xf32>
    %c1 = arith.constant 1 : index
    %c0_5 = arith.constant 0 : index
    %6 = vector.load %arg7[%c1, %c0_5] : memref<32x192xf32, #tpu.memory_space<vmem>>, vector<15x64xf32>
    tpu.vector_store %arg7[%c1, %c0_5], %5 {strides = array<i32>} : memref<32x192xf32, #tpu.memory_space<vmem>>, vector<15x64xf32>,
    %c0_6 = arith.constant 0 : index
    %c64 = arith.constant 64 : index
    %7 = vector.load %arg7[%c0_6, %c64] : memref<32x192xf32, #tpu.memory_space<vmem>>, vector<16x64xf32>
    tpu.vector_store %arg7[%c0_6, %c64], %3 {strides = array<i32>} : memref<32x192xf32, #tpu.memory_space<vmem>>, vector<16x64xf32>,
    %8 = vector.extract_strided_slice %3 {offsets = [1, 0], sizes = [15, 64], strides = [1, 1]} : vector<16x64xf32> to vector<15x64xf32>
    %c0_7 = arith.constant 0 : index
    %c128 = arith.constant 128 : index
    %9 = vector.load %arg7[%c0_7, %c128] : memref<32x192xf32, #tpu.memory_space<vmem>>, vector<15x64xf32>
    tpu.vector_store %arg7[%c0_7, %c128], %8 {strides = array<i32>} : memref<32x192xf32, #tpu.memory_space<vmem>>, vector<15x64xf32>,
    %c15 = arith.constant 15 : index
    %c128_8 = arith.constant 128 : index
    %10 = vector.load %arg7[%c15, %c128_8] : memref<32x192xf32, #tpu.memory_space<vmem>>, vector<1x64xf32>
    tpu.vector_store %arg7[%c15, %c128_8], %0 {strides = array<i32>} : memref<32x192xf32, #tpu.memory_space<vmem>>, vector<1x64xf32>,
    %c1_9 = arith.constant 1 : index
    %c0_10 = arith.constant 0 : index
    %c0_11 = arith.constant 0 : index
    %11 = vector.load %arg1[%c1_9, %c0_10, %c0_11] : memref<2x16x64xf32, #tpu.memory_space<vmem>>, vector<1x16x64xf32>
    %12 = vector.shape_cast %11 : vector<1x16x64xf32> to vector<16x64xf32>
    %c16 = arith.constant 16 : index
    %c0_12 = arith.constant 0 : index
    %13 = vector.load %arg7[%c16, %c0_12] : memref<32x192xf32, #tpu.memory_space<vmem>>, vector<1x64xf32>
    tpu.vector_store %arg7[%c16, %c0_12], %0 {strides = array<i32>} : memref<32x192xf32, #tpu.memory_space<vmem>>, vector<1x64xf32>,
    %14 = vector.extract_strided_slice %12 {offsets = [0, 0], sizes = [15, 64], strides = [1, 1]} : vector<16x64xf32> to vector<15x64xf32>
    %c17 = arith.constant 17 : index
    %c0_13 = arith.constant 0 : index
    %15 = vector.load %arg7[%c17, %c0_13] : memref<32x192xf32, #tpu.memory_space<vmem>>, vector<15x64xf32>
    tpu.vector_store %arg7[%c17, %c0_13], %14 {strides = array<i32>} : memref<32x192xf32, #tpu.memory_space<vmem>>, vector<15x64xf32>,
    %c16_14 = arith.constant 16 : index
    %c64_15 = arith.constant 64 : index
    %16 = vector.load %arg7[%c16_14, %c64_15] : memref<32x192xf32, #tpu.memory_space<vmem>>, vector<16x64xf32>
    tpu.vector_store %arg7[%c16_14, %c64_15], %12 {strides = array<i32>} : memref<32x192xf32, #tpu.memory_space<vmem>>, vector<16x64xf32>,
    %17 = vector.extract_strided_slice %12 {offsets = [1, 0], sizes = [15, 64], strides = [1, 1]} : vector<16x64xf32> to vector<15x64xf32>
    %c16_16 = arith.constant 16 : index
    %c128_17 = arith.constant 128 : index
    %18 = vector.load %arg7[%c16_16, %c128_17] : memref<32x192xf32, #tpu.memory_space<vmem>>, vector<15x64xf32>
    tpu.vector_store %arg7[%c16_16, %c128_17], %17 {strides = array<i32>} : memref<32x192xf32, #tpu.memory_space<vmem>>, vector<15x64xf32>,
    %c31 = arith.constant 31 : index
    %c128_18 = arith.constant 128 : index
    %19 = vector.load %arg7[%c31, %c128_18] : memref<32x192xf32, #tpu.memory_space<vmem>>, vector<1x64xf32>
    tpu.vector_store %arg7[%c31, %c128_18], %0 {strides = array<i32>} : memref<32x192xf32, #tpu.memory_space<vmem>>, vector<1x64xf32>,
    %c0_19 = arith.constant 0 : index
    %c0_20 = arith.constant 0 : index
    %20 = vector.load %arg7[%c0_19, %c0_20] : memref<32x192xf32, #tpu.memory_space<vmem>>, vector<32x192xf32>
    %21 = arith.truncf %20 : vector<32x192xf32> to vector<32x192xbf16>
    %c0_21 = arith.constant 0 : index
    %c0_22 = arith.constant 0 : index
    %22 = vector.load %arg2[%c0_21, %c0_22] : memref<192x128xbf16, #tpu.memory_space<vmem>>, vector<192x128xbf16>
    %cst_23 = arith.constant dense<0.000000e+00> : vector<32x128xf32>
    %23 = tpu.matmul %21, %22, %cst_23 {dimension_numbers = #tpu.dot_dimension_numbers<[1], [0], [0], [1], [0, 0, 1, 1], [], []>} : vector<32x192xbf16>, vector<192x128xbf16>, vector<32x128xf32> -> vector<32x128xf32>
    %c0_24 = arith.constant 0 : index
    %c0_25 = arith.constant 0 : index
    %24 = vector.load %arg3[%c0_24, %c0_25] : memref<1x128xf32, #tpu.memory_space<vmem>>, vector<1x128xf32>
    %25 = vector.broadcast %24 : vector<1x128xf32> to vector<32x128xf32>
    %26 = arith.addf %23, %25 : vector<32x128xf32>
    %cst_26 = arith.constant 0.000000e+00 : f32
    %27 = vector.broadcast %cst_26 : f32 to vector<32x128xf32>
    %28 = arith.maximumf %26, %27 : vector<32x128xf32>
    %29 = vector.extract_strided_slice %28 {offsets = [0, 0], sizes = [16, 128], strides = [1, 1]} : vector<32x128xf32> to vector<16x128xf32>
    %c0_27 = arith.constant 0 : index
    %c0_28 = arith.constant 0 : index
    %30 = vector.load %arg8[%c0_27, %c0_28] : memref<32x384xf32, #tpu.memory_space<vmem>>, vector<1x128xf32>
    tpu.vector_store %arg8[%c0_27, %c0_28], %1 {strides = array<i32>} : memref<32x384xf32, #tpu.memory_space<vmem>>, vector<1x128xf32>,
    %31 = vector.extract_strided_slice %29 {offsets = [0, 0], sizes = [15, 128], strides = [1, 1]} : vector<16x128xf32> to vector<15x128xf32>
    %c1_29 = arith.constant 1 : index
    %c0_30 = arith.constant 0 : index
    %32 = vector.load %arg8[%c1_29, %c0_30] : memref<32x384xf32, #tpu.memory_space<vmem>>, vector<15x128xf32>
    tpu.vector_store %arg8[%c1_29, %c0_30], %31 {strides = array<i32>} : memref<32x384xf32, #tpu.memory_space<vmem>>, vector<15x128xf32>,
    %c0_31 = arith.constant 0 : index
    %c128_32 = arith.constant 128 : index
    %33 = vector.load %arg8[%c0_31, %c128_32] : memref<32x384xf32, #tpu.memory_space<vmem>>, vector<16x128xf32>
    tpu.vector_store %arg8[%c0_31, %c128_32], %29 {strides = array<i32>} : memref<32x384xf32, #tpu.memory_space<vmem>>, vector<16x128xf32>,
    %34 = vector.extract_strided_slice %29 {offsets = [1, 0], sizes = [15, 128], strides = [1, 1]} : vector<16x128xf32> to vector<15x128xf32>
    %c0_33 = arith.constant 0 : index
    %c256 = arith.constant 256 : index
    %35 = vector.load %arg8[%c0_33, %c256] : memref<32x384xf32, #tpu.memory_space<vmem>>, vector<15x128xf32>
    tpu.vector_store %arg8[%c0_33, %c256], %34 {strides = array<i32>} : memref<32x384xf32, #tpu.memory_space<vmem>>, vector<15x128xf32>,
    %c15_34 = arith.constant 15 : index
    %c256_35 = arith.constant 256 : index
    %36 = vector.load %arg8[%c15_34, %c256_35] : memref<32x384xf32, #tpu.memory_space<vmem>>, vector<1x128xf32>
    tpu.vector_store %arg8[%c15_34, %c256_35], %1 {strides = array<i32>} : memref<32x384xf32, #tpu.memory_space<vmem>>, vector<1x128xf32>,
    %37 = vector.extract_strided_slice %28 {offsets = [16, 0], sizes = [16, 128], strides = [1, 1]} : vector<32x128xf32> to vector<16x128xf32>
    %c16_36 = arith.constant 16 : index
    %c0_37 = arith.constant 0 : index
    %38 = vector.load %arg8[%c16_36, %c0_37] : memref<32x384xf32, #tpu.memory_space<vmem>>, vector<1x128xf32>
    tpu.vector_store %arg8[%c16_36, %c0_37], %1 {strides = array<i32>} : memref<32x384xf32, #tpu.memory_space<vmem>>, vector<1x128xf32>,
    %39 = vector.extract_strided_slice %37 {offsets = [0, 0], sizes = [15, 128], strides = [1, 1]} : vector<16x128xf32> to vector<15x128xf32>
    %c17_38 = arith.constant 17 : index
    %c0_39 = arith.constant 0 : index
    %40 = vector.load %arg8[%c17_38, %c0_39] : memref<32x384xf32, #tpu.memory_space<vmem>>, vector<15x128xf32>
    tpu.vector_store %arg8[%c17_38, %c0_39], %39 {strides = array<i32>} : memref<32x384xf32, #tpu.memory_space<vmem>>, vector<15x128xf32>,
    %c16_40 = arith.constant 16 : index
    %c128_41 = arith.constant 128 : index
    %41 = vector.load %arg8[%c16_40, %c128_41] : memref<32x384xf32, #tpu.memory_space<vmem>>, vector<16x128xf32>
    tpu.vector_store %arg8[%c16_40, %c128_41], %37 {strides = array<i32>} : memref<32x384xf32, #tpu.memory_space<vmem>>, vector<16x128xf32>,
    %42 = vector.extract_strided_slice %37 {offsets = [1, 0], sizes = [15, 128], strides = [1, 1]} : vector<16x128xf32> to vector<15x128xf32>
    %c16_42 = arith.constant 16 : index
    %c256_43 = arith.constant 256 : index
    %43 = vector.load %arg8[%c16_42, %c256_43] : memref<32x384xf32, #tpu.memory_space<vmem>>, vector<15x128xf32>
    tpu.vector_store %arg8[%c16_42, %c256_43], %42 {strides = array<i32>} : memref<32x384xf32, #tpu.memory_space<vmem>>, vector<15x128xf32>,
    %c31_44 = arith.constant 31 : index
    %c256_45 = arith.constant 256 : index
    %44 = vector.load %arg8[%c31_44, %c256_45] : memref<32x384xf32, #tpu.memory_space<vmem>>, vector<1x128xf32>
    tpu.vector_store %arg8[%c31_44, %c256_45], %1 {strides = array<i32>} : memref<32x384xf32, #tpu.memory_space<vmem>>, vector<1x128xf32>,
    %c0_46 = arith.constant 0 : index
    %c0_47 = arith.constant 0 : index
    %45 = vector.load %arg8[%c0_46, %c0_47] : memref<32x384xf32, #tpu.memory_space<vmem>>, vector<32x384xf32>
    %46 = arith.truncf %45 : vector<32x384xf32> to vector<32x384xbf16>
    %c0_48 = arith.constant 0 : index
    %c0_49 = arith.constant 0 : index
    %47 = vector.load %arg4[%c0_48, %c0_49] : memref<384x128xbf16, #tpu.memory_space<vmem>>, vector<384x128xbf16>
    %cst_50 = arith.constant dense<0.000000e+00> : vector<32x128xf32>
    %48 = tpu.matmul %46, %47, %cst_50 {dimension_numbers = #tpu.dot_dimension_numbers<[1], [0], [0], [1], [0, 0, 1, 1], [], []>} : vector<32x384xbf16>, vector<384x128xbf16>, vector<32x128xf32> -> vector<32x128xf32>
    %c0_51 = arith.constant 0 : index
    %c0_52 = arith.constant 0 : index
    %49 = vector.load %arg5[%c0_51, %c0_52] : memref<1x128xf32, #tpu.memory_space<vmem>>, vector<1x128xf32>
    %50 = vector.broadcast %49 : vector<1x128xf32> to vector<32x128xf32>
    %51 = arith.addf %48, %50 : vector<32x128xf32>
    %cst_53 = arith.constant 0.000000e+00 : f32
    %52 = vector.broadcast %cst_53 : f32 to vector<32x128xf32>
    %53 = arith.maximumf %51, %52 : vector<32x128xf32>
    %54 = vector.shape_cast %53 : vector<32x128xf32> to vector<2x16x128xf32>
    %c0_54 = arith.constant 0 : index
    %c0_55 = arith.constant 0 : index
    %c0_56 = arith.constant 0 : index
    %55 = vector.load %arg6[%c0_54, %c0_55, %c0_56] : memref<2x16x128xf32, #tpu.memory_space<vmem>>, vector<2x16x128xf32>
    tpu.vector_store %arg6[%c0_54, %c0_55, %c0_56], %54 {strides = array<i32>} : memref<2x16x128xf32, #tpu.memory_space<vmem>>, vector<2x16x128xf32>,
    return
  }
  func.func @transform_0(%arg0: i32) -> (i32, i32, i32) {
    %c0_i32 = arith.constant 0 : i32
    %c0_i32_0 = arith.constant 0 : i32
    %c0_i32_1 = arith.constant 0 : i32
    return %arg0, %c0_i32, %c0_i32_0 : i32, i32, i32
  }
  func.func @transform_1(%arg0: i32) -> (i32, i32) {
    %c0_i32 = arith.constant 0 : i32
    %c0_i32_0 = arith.constant 0 : i32
    %c0_i32_1 = arith.constant 0 : i32
    return %c0_i32, %c0_i32_0 : i32, i32
  }
  func.func @transform_2(%arg0: i32) -> (i32, i32) {
    %c0_i32 = arith.constant 0 : i32
    %c0_i32_0 = arith.constant 0 : i32
    %c0_i32_1 = arith.constant 0 : i32
    return %c0_i32, %c0_i32_0 : i32, i32
  }
  func.func @transform_3(%arg0: i32) -> (i32, i32) {
    %c0_i32 = arith.constant 0 : i32
    %c0_i32_0 = arith.constant 0 : i32
    %c0_i32_1 = arith.constant 0 : i32
    return %c0_i32, %c0_i32_0 : i32, i32
  }
  func.func @transform_4(%arg0: i32) -> (i32, i32) {
    %c0_i32 = arith.constant 0 : i32
    %c0_i32_0 = arith.constant 0 : i32
    %c0_i32_1 = arith.constant 0 : i32
    return %c0_i32, %c0_i32_0 : i32, i32
  }
  func.func @transform_5(%arg0: i32) -> (i32, i32, i32) {
    %c0_i32 = arith.constant 0 : i32
    %c0_i32_0 = arith.constant 0 : i32
    %c0_i32_1 = arith.constant 0 : i32
    return %arg0, %c0_i32, %c0_i32_0 : i32, i32, i32
  }
}

</mosaic_0001>

<bundles_post_ra>
// kernel: tpu_custom_call.1
= control target key start
LH: loop header
LB: loop body
LE: loop exit
PB: predicated region body
PF: predicated region fallthrough
CT: control target
= control target key end

     0   :  { %10 = vsyncpa [#allocation5], 0  ;;  %s1014_s0 = inlined_call_operand.hbm [shape: f32[2,16,64], index: 0, kind: input, shape index: {}]   ;;  %s1015_s1 = inlined_call_operand.hbm [shape: bf16[192,128], index: 1, kind: input, shape index: {}]   ;;  %s1016_s2 = inlined_call_operand.vmem [shape: f32[1,128], index: 2, kind: input, shape index: {}]   ;;  %s1017_s3 = inlined_call_operand.hbm [shape: bf16[384,128], index: 3, kind: input, shape index: {}]   ;;  %s1018_s4 = inlined_call_operand.vmem [shape: f32[1,128], index: 4, kind: input, shape index: {}]   ;;  %s1019_s5 = inlined_call_operand.hbm [shape: f32[2,16,128], index: 5, kind: output, shape index: {}]  }
   0x1   :  { %11 = vsyncpa [#allocation8], 0 }
   0x2   :  { %12 = vsyncpa [#allocation6], 0  ;;  %s912_s18 = smov [#allocation7]  }
   0x3   :  { %s30_s19 = sshll.u32 %s912_s18, 4  ;;  %s31_s19 = int_to_ptr.vmem [resolvable:$true] %s30_s19 }
   0x4   :  { %s834_s20 = scalar_lea.vmem %s31_s19, 1536  ;;  %p839_p1 = scmp.lt.s32.totalorder %s31_s19, %s31_s19 }
   0x5   :  { %p835_p0 = scmp.ne.s32.totalorder %s31_s19, %s834_s20  ;;  %p840_p2 = scmp.lt.s32.totalorder %s834_s20, %s834_s20 }
   0x7   :  { %p841_p3 = por %p840_p2, %p839_p1 }
   0x9   :  { %p842_p4 = pnand %p841_p3, %p835_p0 }
   0xb   :  { %845 = shalt.err (!%p842_p4)
}
   0xc   :  { %s913_s21 = smov 64   ;;  %s914_s22 = smov 4  }
   0xd   :  { %36 = dma.hbm_to_vmem [thread:$0]  %s1015_s1, 1536, %s31_s19, [#allocation8], %s913_s21, %s913_s21, %s914_s22  }
   0xe   :  { %s915_s25 = smov [#allocation4]  }
   0xf   :  { %s18_s26 = sshll.u32 %s915_s25, 4  ;;  %s19_s26 = int_to_ptr.vmem [resolvable:$true] %s18_s26 }
  0x10   :  { %s854_s27 = scalar_lea.vmem %s19_s26, 512  ;;  %p859_p6 = scmp.lt.s32.totalorder %s19_s26, %s19_s26 }
  0x11   :  { %p855_p5 = scmp.ne.s32.totalorder %s19_s26, %s854_s27  ;;  %p860_p7 = scmp.lt.s32.totalorder %s854_s27, %s854_s27 }
  0x13   :  { %p861_p8 = por %p860_p7, %p859_p6 }
  0x15   :  { %p862_p9 = pnand %p861_p8, %p855_p5 }
  0x17   :  { %865 = shalt.err (!%p862_p9)
}
  0x18   :  { %s916_s28 = smov 128   ;;  %s917_s29 = smov 8  }
  0x19   :  { %24 = dma.hbm_to_vmem [thread:$0]  %s1014_s0, 512, %s19_s26, [#allocation5], %s916_s28, %s916_s28, %s917_s29  }
  0x1a   :  { %s918_s1 = smov [#allocation9]  }
  0x1b   :  { %s44_s7 = sshll.u32 %s918_s1, 4  ;;  %s45_s7 = int_to_ptr.vmem [resolvable:$true] %s44_s7 }
  0x1c   :  { %s874_s8 = scalar_lea.vmem %s45_s7, 3072  ;;  %p879_p11 = scmp.lt.s32.totalorder %s45_s7, %s45_s7 }
  0x1d   :  { %p875_p10 = scmp.ne.s32.totalorder %s45_s7, %s874_s8  ;;  %p880_p12 = scmp.lt.s32.totalorder %s874_s8, %s874_s8 }
  0x1f   :  { %p881_p13 = por %p880_p12, %p879_p11 }
  0x21   :  { %p882_p0 = pnand %p881_p13, %p875_p10 }
  0x23   :  { %885 = shalt.err (!%p882_p0)
}
  0x24   :  { %50 = dma.hbm_to_vmem [thread:$0]  %s1017_s3, 3072, %s45_s7, [#allocation8], %s913_s21, %s913_s21, %s914_s22  }
  0x25   :  { %906 = dma.done.wait [#allocation5], 512  }
  0x26   :  { %907 = vsyncadd [#allocation5], 4294966784 }
  0x27   :  { %908 = dma.done.wait [#allocation8], 4608  }
  0x28   :  { %909 = vsyncadd [#allocation8], 4294962688  ;;  %vm65_vm0 = vcmask 516096   ;;  %v919_v0 = vmov 0   ;;  %v920_v1 = vmov 0.0   ;;  %vm75_vm1 = vcmask 523265  }
  0x29   :  { %248 = vmatprep.subr.bf16.mxu0 %v919_v0  ;;  %66 = vst.msk [vmem:[#allocation2] sm:$0x1] %vm65_vm0, %v920_v1  ;;  %97 = vst.msk [vmem:[#allocation2 + $0x1f] sm:$0x1] %vm65_vm0, %v920_v1  ;;  %vm69_vm2 = vcmask 1040384   ;;  %v63_v2 = vld [vmem:[#allocation4] sm:$0xff] }
  0x2a   :  { %126 = vst.msk [vmem:[#allocation2 + $0x3f] sm:$0x1] %vm65_vm0, %v920_v1  ;;  %340 = vst [vmem:[#allocation3 + $0x5f] sm:$0x1] %v920_v1  ;;  %v64_v3 = vld [vmem:[#allocation4 + $0x8] sm:$0xff]  ;;  %vm88_vm3 = vcmask 1046528   ;;  %79 = vrot.lane.b32.xlu0 %v63_v2, %s913_s21 }
  0x2b   :  { %101 = vst.msk [vmem:[#allocation2 + $0x20] sm:$0x1] %vm65_vm0, %v920_v1  ;;  %301 = vst [vmem:[#allocation3] sm:$0x1] %v920_v1  ;;  %vm95_vm4 = vcmask 522240   ;;  %v99_v4 = vld [vmem:[#allocation4 + $0x10] sm:$0xff] }
  0x2c   :  { %320 = vst [vmem:[#allocation3 + $0x2f] sm:$0x1] %v920_v1  ;;  %321 = vst [vmem:[#allocation3 + $0x30] sm:$0x1] %v920_v1  ;;  %vm77_vm5 = vcmask 523264   ;;  %v70_v5 = vrot.slane %v63_v2, 7  ;;  %111 = vrot.lane.b32.xlu1 %v99_v4, %s913_s21 }
  0x2d   :  { %v89_v6 = vrot.slane %v63_v2, 1  ;;  %v71_v7 = vrot.slane %v64_v3, 7  ;;  %v90_v8 = vrot.slane %v64_v3, 1  ;;  %v100_v9 = vld [vmem:[#allocation4 + $0x18] sm:$0xff]  ;;  %v104_v11 = vrot.slane %v99_v4, 7  ;;  %v791_v19 = vld [vmem:[#allocation7 + $0x30] sm:$0xff]  }
  0x2e   :  { %v790_v10 = vld [vmem:[#allocation7 + $0x38] sm:$0xff]   ;;  %v119_v12 = vrot.slane %v99_v4, 1  ;;  %v105_v13 = vrot.slane %v100_v9, 7  ;;  %v120_v14 = vrot.slane %v100_v9, 1  ;;  %76 = vst.msk [vmem:[#allocation2] sm:$0xfe] %vm75_vm1, %v70_v5  ;;  %81 = vrot.lane.b32.xlu0 %v64_v3, %s913_s21 }
  0x2f   :  { %96 = vst.msk [vmem:[#allocation2 + $0x18] sm:$0x7f] %vm95_vm4, %v90_v8  ;;  %v72_v15 = vsel %vm69_vm2, %v70_v5, %v71_v7  ;;  %v91_v16 = vsel %vm88_vm3, %v89_v6, %v90_v8  ;;  %249 = vmatpush1.bf16.msra.mxu0 %v790_v10  ;;  %v792_v20 = vld [vmem:[#allocation7 + $0x28] sm:$0xff]   ;;  %v793_v21 = vld [vmem:[#allocation7 + $0x20] sm:$0xff]   ;;  %v794_v24 = vld [vmem:[#allocation7 + $0x18] sm:$0xff]   ;;  %vm85_vm6 = vcmask 1048064  }
  0x30   :  { %109 = vst.msk [vmem:[#allocation2 + $0x20] sm:$0xfe] %vm75_vm1, %v104_v11  ;;  %v106_v17 = vsel %vm69_vm2, %v104_v11, %v105_v13  ;;  %v121_v18 = vsel %vm88_vm3, %v119_v12, %v120_v14  ;;  %250 = vmatprep.subr.bf16.mxu0 %v919_v0  ;;  %113 = vrot.lane.b32.xlu1 %v100_v9, %s913_s21  ;;  %v802_v26 = vld [vmem:[#allocation9 + $0x78] sm:$0xff]   ;;  %v795_v27 = vld [vmem:[#allocation7 + $0x10] sm:$0xff]   ;;  %v806_v31 = vld [vmem:[#allocation9 + $0x68] sm:$0xff]   ;;  %s921_s12 = smov [#allocation10]  }
  0x31   :  { %125 = vst.msk [vmem:[#allocation2 + $0x38] sm:$0x7f] %vm95_vm4, %v120_v14  ;;  %v803_v28 = vld [vmem:[#allocation9 + $0x38] sm:$0xff]   ;;  %722 = vmatprep.subr.bf16.mxu1 %v802_v26  ;;  %v804_v29 = vld [vmem:[#allocation9 + $0x70] sm:$0xff]   ;;  %v796_v32 = vld [vmem:[#allocation7 + $0x8] sm:$0xff]   ;;  %s669_s13 = sshll.u32 %s921_s12, 4  ;;  %s670_s13 = int_to_ptr.vmem [resolvable:$true] %s669_s13 }
  0x32   :  { %78 = vst.msk [vmem:[#allocation2 + $0x10] sm:$0xff] %vm77_vm5, %v72_v15  ;;  %94 = vst.msk [vmem:[#allocation2 + $0x8] sm:$0xff] %vm77_vm5, %v91_v16  ;;  %723 = vmatpush3.bf16.msra.mxu1 %v803_v28  ;;  %v805_v30 = vld [vmem:[#allocation9 + $0x30] sm:$0xff]   ;;  %v807_v33 = vld [vmem:[#allocation9 + $0x28] sm:$0xff]   ;;  %p891_p2 = scmp.lt.s32.totalorder %s670_s13, %s670_s13 }
  0x33   :  { %124 = vst.msk [vmem:[#allocation2 + $0x28] sm:$0xff] %vm77_vm5, %v121_v18  ;;  %110 = vst.msk [vmem:[#allocation2 + $0x30] sm:$0xff] %vm77_vm5, %v106_v17  ;;  %251 = vmatpush1.bf16.msra.mxu0 %v791_v19  ;;  %724 = vmatprep.subr.bf16.mxu1 %v804_v29  ;;  %v797_v34 = vld [vmem:[#allocation7] sm:$0xff]   ;;  %v798_v35 = vld [vmem:[#allocation7 + $0x58] sm:$0xff]  }
  0x34   :  { %252 = vmatprep.subr.bf16.mxu0 %v919_v0  ;;  %v799_v36 = vld [vmem:[#allocation7 + $0x50] sm:$0xff]   ;;  %v800_v37 = vld [vmem:[#allocation7 + $0x48] sm:$0xff]   ;;  %v801_v38 = vld [vmem:[#allocation7 + $0x40] sm:$0xff]  }
  0x35   :  { %v808_v52 = vld [vmem:[#allocation9 + $0x60] sm:$0xff]   ;;  %v810_v54 = vld [vmem:[#allocation9 + $0x58] sm:$0xff]   ;;  %v812_v56 = vld [vmem:[#allocation9 + $0x50] sm:$0xff]  }
  0x36   :  { %v130_v23 = vld [vmem:[#allocation2 + $0x18] sm:$0xff]  ;;  %725 = vmatpush3.bf16.msra.mxu1 %v805_v30  ;;  %v809_v53 = vld [vmem:[#allocation9 + $0x20] sm:$0xff]   ;;  %v813_v57 = vld [vmem:[#allocation9 + $0x10] sm:$0xff]  }
  0x37   :  { %253 = vmatpush1.bf16.msra.mxu0 %v792_v20  ;;  %726 = vmatprep.subr.bf16.mxu1 %v806_v31  ;;  %v811_v55 = vld [vmem:[#allocation9 + $0x18] sm:$0xff]   ;;  %v814_v58 = vld [vmem:[#allocation9 + $0x48] sm:$0xff]   ;;  %v816_v60 = vld [vmem:[#allocation9 + $0x40] sm:$0xff]  }
  0x38   :  { %254 = vmatprep.subr.bf16.mxu0 %v919_v0  ;;  %v134_v44 = vld [vmem:[#allocation2 + $0x38] sm:$0xff]  ;;  %v815_v59 = vld [vmem:[#allocation9 + $0x8] sm:$0xff]   ;;  %v817_v61 = vld [vmem:[#allocation9] sm:$0xff]  }
  0x39   :  { %v128_v22 = vld [vmem:[#allocation2 + $0x8] sm:$0xff]  ;;  %v818_v62 = vld [vmem:[#allocation9 + $0xb8] sm:$0xff]   ;;  %v682_v63 = vld [vmem:[%s1016_s2] ss:$0 sm:$0xff] }
  0x3a   :  { %v136_v25 = vpack.c.bf16 %v130_v23, %v128_v22  ;;  %727 = vmatpush3.bf16.msra.mxu1 %v807_v33  ;;  %v132_v43 = vld [vmem:[#allocation2 + $0x28] sm:$0xff] }
  0x3b   :  { %255 = vmatpush1.bf16.msra.mxu0 %v793_v21  ;;  %v138_v47 = vpack.c.bf16 %v134_v44, %v132_v43  ;;  %728 = vmatprep.subr.bf16.mxu1 %v808_v52  ;;  %v820_v33 = vld [vmem:[#allocation9 + $0xa8] sm:$0xff]  }
  0x3c   :  { %256 = vmatprep.subr.bf16.mxu0 %v919_v0  ;;  %695 = vmatprep.mubr.msk.bf16.mxu0 %vm77_vm5, %v136_v25 }
  0x3e   :  { %729 = vmatpush3.bf16.msra.mxu1 %v809_v53 }
  0x3f   :  { %257 = vmatpush1.bf16.msra.mxu0 %v794_v24  ;;  %730 = vmatprep.subr.bf16.mxu1 %v810_v54 }
  0x40   :  { %258 = vmatprep.subr.bf16.mxu0 %v919_v0 }
  0x42   :  { %731 = vmatpush3.bf16.msra.mxu1 %v811_v55  ;;  %v697_v55 = vld [vmem:[%s1018_s4] ss:$0 sm:$0xff]  ;;  %s886_s4 = scalar_lea.vmem %s670_s13, 512 }
  0x43   :  { %259 = vmatpush1.bf16.msra.mxu0 %v795_v27  ;;  %732 = vmatprep.subr.bf16.mxu1 %v812_v56  ;;  %v819_v27 = vld [vmem:[#allocation9 + $0xb0] sm:$0xff]   ;;  %p887_p1 = scmp.ne.s32.totalorder %s670_s13, %s886_s4  ;;  %p892_p3 = scmp.lt.s32.totalorder %s886_s4, %s886_s4 }
  0x44   :  { %260 = vmatprep.subr.bf16.mxu0 %v919_v0 }
  0x45   :  { %p893_p4 = por %p892_p3, %p891_p2 }
  0x46   :  { %733 = vmatpush3.bf16.msra.mxu1 %v813_v57 }
  0x47   :  { %261 = vmatpush1.bf16.msra.mxu0 %v796_v32  ;;  %734 = vmatprep.subr.bf16.mxu1 %v814_v58  ;;  %p894_p5 = pnand %p893_p4, %p887_p1 }
  0x48   :  { %262 = vmatprep.subr.bf16.mxu0 %v919_v0 }
  0x4a   :  { %735 = vmatpush3.bf16.msra.mxu1 %v815_v59 }
  0x4b   :  { %263 = vmatpush1.bf16.msra.mxu0 %v797_v34  ;;  %736 = vmatprep.subr.bf16.mxu1 %v816_v60 }
  0x4c   :  { %272 = vmatprep.subr.bf16.mxu0 %v919_v0 }
  0x4e   :  { %737 = vmatpush3.bf16.msra.mxu1 %v817_v61 }
  0x4f   :  { %273 = vmatpush2.bf16.msra.mxu0 %v798_v35  ;;  %760 = vmatprep.subr.bf16.mxu1 %v818_v62 }
  0x50   :  { %274 = vmatprep.subr.bf16.mxu0 %v919_v0 }
  0x53   :  { %275 = vmatpush2.bf16.msra.mxu0 %v799_v36 }
  0x54   :  { %276 = vmatprep.subr.bf16.mxu0 %v919_v0 }
  0x57   :  { %277 = vmatpush2.bf16.msra.mxu0 %v800_v37  ;;  %v821_v37 = vld [vmem:[#allocation9 + $0xa0] sm:$0xff]  }
  0x58   :  { %278 = vmatprep.subr.bf16.mxu0 %v919_v0 }
  0x5b   :  { %279 = vmatpush2.bf16.msra.mxu0 %v801_v38 }
  0x9c   :  { %v80_v39 = vpop.permute.xlu0 %79 }
  0x9d   :  { %86 = vst.msk [vmem:[#allocation2] sm:$0xff] %vm85_vm6, %v80_v39  ;;  %v822_v39 = vld [vmem:[#allocation9 + $0x98] sm:$0xff]  }
  0x9e   :  { %v112_v40 = vpop.permute.xlu1 %111 }
  0x9f   :  { %117 = vst.msk [vmem:[#allocation2 + $0x20] sm:$0xff] %vm85_vm6, %v112_v40  ;;  %v823_v40 = vld [vmem:[#allocation9 + $0x90] sm:$0xff]  }
  0xa0   :  { %v82_v41 = vpop.permute.xlu0 %81 }
  0xa1   :  { %87 = vst.msk [vmem:[#allocation2 + $0x10] sm:$0xff] %vm85_vm6, %v82_v41  ;;  %v824_v41 = vld [vmem:[#allocation9 + $0x88] sm:$0xff]  }
  0xa2   :  { %v114_v42 = vpop.permute.xlu1 %113 }
  0xa3   :  { %118 = vst.msk [vmem:[#allocation2 + $0x30] sm:$0xff] %vm85_vm6, %v114_v42  ;;  %v825_v42 = vld [vmem:[#allocation9 + $0x80] sm:$0xff]  }
  0xa4   :  { %v127_v45 = vld [vmem:[#allocation2] sm:$0xff] }
  0xa6   :  { %v131_v49 = vld [vmem:[#allocation2 + $0x20] sm:$0xff] }
  0xa8   :  { %v129_v46 = vld [vmem:[#allocation2 + $0x10] sm:$0xff] }
  0xa9   :  { %v135_v48 = vpack.c.bf16 %v129_v46, %v127_v45 }
  0xaa   :  { %v133_v50 = vld [vmem:[#allocation2 + $0x30] sm:$0xff] }
  0xab   :  { %281 = vmatmul.mubr.bf16.vlgmr.msra.gmra.mxu0 %v135_v48  ;;  %v137_v51 = vpack.c.bf16 %v133_v50, %v131_v49 }
  0xac   :  { %696 = vmatprep.mubr.msk.bf16.mxu0 %vm77_vm5, %v138_v47 }
  0xb3   :  { %289 = vmatmul.mubr.bf16.gmra.mxu0 %v137_v51 }
 0x16b   :  { %v282_v0 = vpop.f32.mrf.mxu0 }
 0x16c   :  { %v283_v1 = vadd.f32 %v682_v63, %v282_v0 }
 0x16d   :  { %v284_v2 = vpop.f32.mrf.mxu0 }
 0x16e   :  { %v297_v3 = vmax.f32 %v283_v1, 0.0 }
 0x16f   :  { %v285_v4 = vpop.f32.mrf.mxu0 }
 0x170   :  { %v304_v5 = vrot.slane %v297_v3, 7  ;;  %v286_v6 = vadd.f32 %v682_v63, %v285_v4  ;;  %v313_v9 = vrot.slane %v297_v3, 1 }
 0x171   :  { %v287_v7 = vpop.f32.mrf.mxu0 }
 0x172   :  { %309 = vst [vmem:[#allocation3] sm:$0xfe] %v304_v5  ;;  %v298_v8 = vmax.f32 %v286_v6, 0.0 }
 0x173   :  { %v290_v10 = vpop.f32.mrf.mxu0 }
 0x174   :  { %v305_v11 = vrot.slane %v298_v8, 7  ;;  %v314_v12 = vrot.slane %v298_v8, 1  ;;  %v291_v13 = vadd.f32 %v682_v63, %v290_v10  ;;  %v354_v14 = vpack.c.bf16 %v298_v8, %v297_v3 }
 0x175   :  { %v292_v15 = vpop.f32.mrf.mxu0 }
 0x176   :  { %v306_v16 = vsel %vm69_vm2, %v304_v5, %v305_v11  ;;  %v315_v17 = vsel %vm88_vm3, %v313_v9, %v314_v12  ;;  %319 = vst [vmem:[#allocation3 + $0x28] sm:$0x7f] %v314_v12  ;;  %v299_v18 = vmax.f32 %v291_v13, 0.0  ;;  %590 = vmatprep.mubr.bf16.mxu1 %v354_v14 }
 0x177   :  { %v293_v19 = vpop.f32.mrf.mxu0 }
 0x178   :  { %v324_v20 = vrot.slane %v299_v18, 7  ;;  %v294_v21 = vadd.f32 %v682_v63, %v293_v19  ;;  %v333_v24 = vrot.slane %v299_v18, 1 }
 0x179   :  { %v295_v22 = vpop.f32.mrf.mxu0  ;;  %v341_v23 = vld [vmem:[#allocation3] sm:$0xff] }
 0x17a   :  { %329 = vst [vmem:[#allocation3 + $0x30] sm:$0xfe] %v324_v20  ;;  %v300_v25 = vmax.f32 %v294_v21, 0.0  ;;  %v353_v26 = vpack.c.bf16 %v306_v16, %v341_v23 }
 0x17c   :  { %v325_v28 = vrot.slane %v300_v25, 7  ;;  %v334_v29 = vrot.slane %v300_v25, 1  ;;  %591 = vmatmul.mubr.bf16.vlgmr.msra.gmra.mxu1 %v353_v26  ;;  %v357_v30 = vpack.c.bf16 %v300_v25, %v299_v18 }
 0x17d   :  { %761 = vmatpush3.bf16.msra.mxu1 %v818_v62  ;;  %v346_v34 = vld [vmem:[#allocation3 + $0x28] sm:$0xff] }
 0x17e   :  { %v326_v31 = vsel %vm69_vm2, %v324_v20, %v325_v28  ;;  %v335_v32 = vsel %vm88_vm3, %v333_v24, %v334_v29  ;;  %339 = vst [vmem:[#allocation3 + $0x58] sm:$0x7f] %v334_v29  ;;  %762 = vmatprep.subr.bf16.mxu1 %v819_v27  ;;  %598 = vmatprep.mubr.bf16.mxu1 %v357_v30 }
 0x17f   :  { %v355_v38 = vpack.c.bf16 %v346_v34, %v315_v17 }
 0x181   :  { %763 = vmatpush3.bf16.msra.mxu1 %v819_v27  ;;  %v347_v35 = vld [vmem:[#allocation3 + $0x30] sm:$0xff] }
 0x182   :  { %764 = vmatprep.subr.bf16.mxu1 %v820_v33  ;;  %v356_v36 = vpack.c.bf16 %v326_v31, %v347_v35 }
 0x184   :  { %599 = vmatmul.mubr.bf16.gmra.mxu1 %v356_v36 }
 0x185   :  { %765 = vmatpush3.bf16.msra.mxu1 %v820_v33  ;;  %776 = vmatprep.mubr.bf16.mxu1 %v355_v38  ;;  %v352_v43 = vld [vmem:[#allocation3 + $0x58] sm:$0xff] }
 0x186   :  { %766 = vmatprep.subr.bf16.mxu1 %v821_v37  ;;  %v358_v44 = vpack.c.bf16 %v352_v43, %v335_v32 }
 0x189   :  { %767 = vmatpush3.bf16.msra.mxu1 %v821_v37 }
 0x18a   :  { %768 = vmatprep.subr.bf16.mxu1 %v822_v39 }
 0x18d   :  { %769 = vmatpush3.bf16.msra.mxu1 %v822_v39 }
 0x18e   :  { %770 = vmatprep.subr.bf16.mxu1 %v823_v40 }
 0x191   :  { %771 = vmatpush3.bf16.msra.mxu1 %v823_v40 }
 0x192   :  { %772 = vmatprep.subr.bf16.mxu1 %v824_v41 }
 0x195   :  { %773 = vmatpush3.bf16.msra.mxu1 %v824_v41 }
 0x196   :  { %774 = vmatprep.subr.bf16.mxu1 %v825_v42 }
 0x199   :  { %775 = vmatpush3.bf16.msra.mxu1 %v825_v42 }
 0x19c   :  { %777 = vmatmul.mubr.bf16.vlgmr.msra.gmra.mxu1 %v358_v44 }
 0x23c   :  { %v738_v45 = vpop.f32.mrf.mxu1 }
 0x23e   :  { %v739_v46 = vpop.f32.mrf.mxu1 }
 0x23f   :  { %v740_v54 = vadd.f32 %v739_v46, %v738_v45 }
 0x240   :  { %v741_v47 = vpop.f32.mrf.mxu1 }
 0x241   :  { %v593_v61 = vadd.f32 %v740_v54, %v697_v55 }
 0x242   :  { %v742_v48 = vpop.f32.mrf.mxu1 }
 0x243   :  { %v743_v59 = vadd.f32 %v742_v48, %v741_v47 }
 0x244   :  { %v744_v49 = vpop.f32.mrf.mxu1 }
 0x245   :  { %v596_v5 = vadd.f32 %v743_v59, %v697_v55 }
 0x246   :  { %v745_v50 = vpop.f32.mrf.mxu1 }
 0x247   :  { %v746_v52 = vadd.f32 %v745_v50, %v744_v49 }
 0x248   :  { %v747_v51 = vpop.f32.mrf.mxu1 }
 0x249   :  { %v601_v57 = vadd.f32 %v746_v52, %v697_v55 }
 0x24a   :  { %v748_v53 = vpop.f32.mrf.mxu1 }
 0x24b   :  { %v749_v56 = vadd.f32 %v748_v53, %v747_v51 }
 0x24d   :  { %v604_v1 = vadd.f32 %v749_v56, %v697_v55 }
 0x25c   :  { %v778_v58 = vpop.f32.mrf.mxu1 }
 0x25d   :  { %v650_v60 = vadd.f32 %v778_v58, %v601_v57 }
 0x25e   :  { %v641_v62 = vpop.f32.mrf.mxu1 }
 0x25f   :  { %v658_v63 = vmax.f32 %v650_v60, 0.0  ;;  %v642_v0 = vadd.f32 %v641_v62, %v593_v61 }
 0x260   :  { %v779_v2 = vpop.f32.mrf.mxu1 }
 0x261   :  { %662 = vst [vmem:[#allocation10 + $0x10] sm:$0xff] %v658_v63  ;;  %v656_v3 = vmax.f32 %v642_v0, 0.0  ;;  %v653_v4 = vadd.f32 %v779_v2, %v604_v1 }
 0x262   :  { %v644_v6 = vpop.f32.mrf.mxu1 }
 0x263   :  { %660 = vst [vmem:[#allocation10] sm:$0xff] %v656_v3  ;;  %v659_v7 = vmax.f32 %v653_v4, 0.0  ;;  %v645_v8 = vadd.f32 %v644_v6, %v596_v5 }
 0x265   :  { %663 = vst [vmem:[#allocation10 + $0x18] sm:$0xff] %v659_v7  ;;  %v657_v9 = vmax.f32 %v645_v8, 0.0 }
 0x267   :  { %661 = vst [vmem:[#allocation10 + $0x8] sm:$0xff] %v657_v9 }
 0x268   :  { %897 = shalt.err (!%p894_p5)
}
 0x269   :  { %675 = dma.vmem_to_hbm [thread:$0]  %s670_s13, 512, %s1019_s5, [#allocation6], %s916_s28, %s916_s28, %s917_s29  }
 0x26a   :  { %910 = dma.done.wait [#allocation6], 512  }
 0x26b   :  { %911 = vsyncadd [#allocation6], 4294966784 }
 0x26c   :  { %679 = vsyncpa [#allocation5], 1 }
 0x26d   :  { %680 = vsyncpa [#allocation8], 1 }
 0x26e   :  { %681 = vsyncpa [#allocation6], 1 }

</bundles_post_ra>
